<compile_context>
chip_gen: v7x
topology: tpu7x:2x2x1
jax: 0.10.0
libtpu: 0.0.40
codegen_flags: <defaults>
</compile_context>

<pallas_src>
import jax
import jax.numpy as jnp
from jax.experimental import pallas as pl
from jax.experimental.pallas import tpu as pltpu

IN_DIM = 100
HID_DIM = 512
OUT_DIM = 100

PAD_OUT = 128      # OUT_DIM padded to a lane multiple (lane-dense stores)

MAX_TILE_B = 4096  # batch rows per grid step at large batch (multiple of 16)
SPLIT_MIN_B = 512  # above this, force >= 2 grid steps so both v7x TCs get work


def _round_up(x, m):
    return (x + m - 1) // m * m


def _cdiv(a, b):
    return (a + b - 1) // b


def _pick_tile_b(B):
    """Batch-tile size: big tiles for large B, >=2 tiles for v7x mid-size B,
    one full-batch block for small B (block dim == array dim is always legal)."""
    if B > MAX_TILE_B:
        return MAX_TILE_B
    if B >= SPLIT_MIN_B:
        return _round_up(_cdiv(B, 2), 16)   # >= 2 grid steps for the 2-TC case
    return B                                # single block covering the whole batch


def _mlp_kernel(x_ref, w1_ref, b1_ref, w2_ref, b2_ref, o_ref):
    # x_ref : (TB, 100) f32     w1_ref: (100, 512) bf16   b1_ref: (1, 512) f32
    # w2_ref: (512, 128) bf16   b2_ref: (1, 128) f32      o_ref : (TB, 128) bf16
    x = x_ref[...].astype(jnp.bfloat16)                               # in-kernel cast (VPU)
    h = jnp.dot(x, w1_ref[...], preferred_element_type=jnp.float32)   # (TB, 512) f32 acc
    h = jnp.maximum(h + b1_ref[...], 0.0)                             # bias + ReLU in f32
    h = h.astype(jnp.bfloat16)                                        # bf16 MXU operand
    y = jnp.dot(h, w2_ref[...], preferred_element_type=jnp.float32)   # (TB, 128) f32 acc
    y = y + b2_ref[...]
    o_ref[...] = y.astype(o_ref.dtype)                                # bf16 store


def simple_art_model_forward(x, w1, b1, w2, b2):
    """x: (B, 100) f32.  w1: (100, 512), b1: (512,), w2: (512, 100), b2: (100,).

    Returns (B, 100) f32, matching PyTorch nn.Sequential(Linear, ReLU, Linear)
    with weights pre-transposed to (in, out) layout.
    """
    B = x.shape[0]
    TB = _pick_tile_b(B)
    num_tiles = _cdiv(B, TB)   # partial last block handled by Pallas (masked writes)

    # Weights: cast to bf16, pad only w2/b2's output dim to 128 lanes.
    # (One-time tiny ops; activations are NOT touched in the wrapper.)
    w1p = w1.astype(jnp.bfloat16)                                     # (100, 512)
    w2p = jnp.pad(w2, ((0, 0), (0, PAD_OUT - OUT_DIM))).astype(jnp.bfloat16)  # (512, 128)
    b1p = b1.reshape(1, HID_DIM).astype(jnp.float32)
    b2p = jnp.pad(b2, (0, PAD_OUT - OUT_DIM)).reshape(1, PAD_OUT).astype(jnp.float32)

    cost = pl.CostEstimate(
        flops=2 * B * (IN_DIM * HID_DIM + HID_DIM * PAD_OUT),
        transcendentals=0,
        bytes_accessed=(x.size * 4 + w1p.size * 2 + w2p.size * 2
                        + b1p.size * 4 + b2p.size * 4 + B * PAD_OUT * 2),
    )

    out = pl.pallas_call(
        _mlp_kernel,
        out_shape=jax.ShapeDtypeStruct((B, PAD_OUT), jnp.bfloat16),
        grid=(num_tiles,),
        in_specs=[
            pl.BlockSpec((TB, IN_DIM), lambda i: (i, 0)),        # x tile: pipelined over B
            pl.BlockSpec((IN_DIM, HID_DIM), lambda i: (0, 0)),   # w1: resident
            pl.BlockSpec((1, HID_DIM), lambda i: (0, 0)),        # b1: resident
            pl.BlockSpec((HID_DIM, PAD_OUT), lambda i: (0, 0)),  # w2: resident
            pl.BlockSpec((1, PAD_OUT), lambda i: (0, 0)),        # b2: resident
        ],
        out_specs=pl.BlockSpec((TB, PAD_OUT), lambda i: (i, 0)),
        compiler_params=pltpu.CompilerParams(
            dimension_semantics=("parallel",),   # 2-TC sharding on v7x; harmless elsewhere
            vmem_limit_bytes=32 << 20,           # covers v5e's lower 16 MiB scoped default
        ),
        cost_estimate=cost,
    )(x, w1p, b1p, w2p, b2p)

    # Only the 28 padded output lanes are dropped; cast back to f32 to match
    # the PyTorch module's output dtype.
    return out[:, :OUT_DIM].astype(jnp.float32)


def init_params(key):
    """Deterministic init mirroring nn.Linear's uniform(-1/sqrt(fan_in), +1/sqrt(fan_in))."""
    k1, k2, k3, k4 = jax.random.split(key, 4)
    bound1 = 1.0 / jnp.sqrt(IN_DIM)
    bound2 = 1.0 / jnp.sqrt(HID_DIM)
    # Stored already transposed to (in, out) so the kernel does x @ W directly.
    w1 = jax.random.uniform(k1, (IN_DIM, HID_DIM), jnp.float32, -bound1, bound1)
    b1 = jax.random.uniform(k2, (HID_DIM,), jnp.float32, -bound1, bound1)
    w2 = jax.random.uniform(k3, (HID_DIM, OUT_DIM), jnp.float32, -bound2, bound2)
    b2 = jax.random.uniform(k4, (OUT_DIM,), jnp.float32, -bound2, bound2)
    return w1, b1, w2, b2


def reference_forward(x, w1, b1, w2, b2):
    h = jnp.maximum(x @ w1 + b1, 0.0)
    return h @ w2 + b2


if __name__ == "__main__":
    key = jax.random.PRNGKey(0)
    kx, kp = jax.random.split(key)

    B = 8
    x = jax.random.normal(kx, (B, IN_DIM), jnp.float32)
    w1, b1, w2, b2 = init_params(kp)

    out = simple_art_model_forward(x, w1, b1, w2, b2)
    out = jax.block_until_ready(out)

    ref = reference_forward(x, w1, b1, w2, b2)
    assert out.shape == (B, OUT_DIM)
    # bf16 MXU operands + bf16 output store with f32 accumulation: relax
    # tolerance vs. the pure-f32 reference.
    assert jnp.allclose(out, ref, atol=2e-2, rtol=2e-2), (
        float(jnp.max(jnp.abs(out - ref))))

    print("KERNEL_OK")
</pallas_src>

<mosaic_0001>
module attributes {stable_mosaic.version = 11 : i64} {
  func.func @_mlp_kernel(%arg0: i32, %arg1: memref<8x100xf32, #tpu.memory_space<vmem>>, %arg2: memref<100x512xbf16, #tpu.memory_space<vmem>>, %arg3: memref<1x512xf32, #tpu.memory_space<vmem>>, %arg4: memref<512x128xbf16, #tpu.memory_space<vmem>>, %arg5: memref<1x128xf32, #tpu.memory_space<vmem>>, %arg6: memref<8x128xbf16, #tpu.memory_space<vmem>>) attributes {dimension_semantics = [#tpu.dimension_semantics<parallel>], iteration_bounds = array<i64: 1>, scalar_prefetch = 0 : i64, scratch_operands = 0 : i64, tpu.core_type = #tpu.core_type<tc>, window_params = [{transform_indices = @transform_0, window_bounds = array<i64: 8, 100>}, {pipeline_mode = #tpu.pipeline_mode<synchronous>, transform_indices = @transform_1, window_bounds = array<i64: 100, 512>}, {pipeline_mode = #tpu.pipeline_mode<synchronous>, transform_indices = @transform_2, window_bounds = array<i64: 1, 512>}, {pipeline_mode = #tpu.pipeline_mode<synchronous>, transform_indices = @transform_3, window_bounds = array<i64: 512, 128>}, {pipeline_mode = #tpu.pipeline_mode<synchronous>, transform_indices = @transform_4, window_bounds = array<i64: 1, 128>}, {transform_indices = @transform_5, window_bounds = array<i64: 8, 128>}]} {
    %c0 = arith.constant 0 : index
    %c0_0 = arith.constant 0 : index
    %0 = vector.load %arg1[%c0, %c0_0] : memref<8x100xf32, #tpu.memory_space<vmem>>, vector<8x100xf32>
    %1 = arith.truncf %0 : vector<8x100xf32> to vector<8x100xbf16>
    %c0_1 = arith.constant 0 : index
    %c0_2 = arith.constant 0 : index
    %2 = vector.load %arg2[%c0_1, %c0_2] : memref<100x512xbf16, #tpu.memory_space<vmem>>, vector<100x512xbf16>
    %cst = arith.constant dense<0.000000e+00> : vector<8x512xf32>
    %3 = tpu.matmul %1, %2, %cst {dimension_numbers = #tpu.dot_dimension_numbers<[1], [0], [0], [1], [0, 0, 1, 1], [], []>} : vector<8x100xbf16>, vector<100x512xbf16>, vector<8x512xf32> -> vector<8x512xf32>
    %c0_3 = arith.constant 0 : index
    %c0_4 = arith.constant 0 : index
    %4 = vector.load %arg3[%c0_3, %c0_4] : memref<1x512xf32, #tpu.memory_space<vmem>>, vector<1x512xf32>
    %5 = vector.broadcast %4 : vector<1x512xf32> to vector<8x512xf32>
    %6 = arith.addf %3, %5 : vector<8x512xf32>
    %cst_5 = arith.constant 0.000000e+00 : f32
    %7 = vector.broadcast %cst_5 : f32 to vector<8x512xf32>
    %8 = arith.maximumf %6, %7 : vector<8x512xf32>
    %9 = arith.truncf %8 : vector<8x512xf32> to vector<8x512xbf16>
    %c0_6 = arith.constant 0 : index
    %c0_7 = arith.constant 0 : index
    %10 = vector.load %arg4[%c0_6, %c0_7] : memref<512x128xbf16, #tpu.memory_space<vmem>>, vector<512x128xbf16>
    %cst_8 = arith.constant dense<0.000000e+00> : vector<8x128xf32>
    %11 = tpu.matmul %9, %10, %cst_8 {dimension_numbers = #tpu.dot_dimension_numbers<[1], [0], [0], [1], [0, 0, 1, 1], [], []>} : vector<8x512xbf16>, vector<512x128xbf16>, vector<8x128xf32> -> vector<8x128xf32>
    %c0_9 = arith.constant 0 : index
    %c0_10 = arith.constant 0 : index
    %12 = vector.load %arg5[%c0_9, %c0_10] : memref<1x128xf32, #tpu.memory_space<vmem>>, vector<1x128xf32>
    %13 = vector.broadcast %12 : vector<1x128xf32> to vector<8x128xf32>
    %14 = arith.addf %11, %13 : vector<8x128xf32>
    %15 = arith.truncf %14 : vector<8x128xf32> to vector<8x128xbf16>
    %c0_11 = arith.constant 0 : index
    %c0_12 = arith.constant 0 : index
    %16 = vector.load %arg6[%c0_11, %c0_12] : memref<8x128xbf16, #tpu.memory_space<vmem>>, vector<8x128xbf16>
    tpu.vector_store %arg6[%c0_11, %c0_12], %15 {strides = array<i32>} : memref<8x128xbf16, #tpu.memory_space<vmem>>, vector<8x128xbf16>,
    return
  }
  func.func @transform_0(%arg0: i32) -> (i32, i32) {
    %c0_i32 = arith.constant 0 : i32
    %c0_i32_0 = arith.constant 0 : i32
    return %arg0, %c0_i32 : i32, i32
  }
  func.func @transform_1(%arg0: i32) -> (i32, i32) {
    %c0_i32 = arith.constant 0 : i32
    %c0_i32_0 = arith.constant 0 : i32
    %c0_i32_1 = arith.constant 0 : i32
    return %c0_i32, %c0_i32_0 : i32, i32
  }
  func.func @transform_2(%arg0: i32) -> (i32, i32) {
    %c0_i32 = arith.constant 0 : i32
    %c0_i32_0 = arith.constant 0 : i32
    %c0_i32_1 = arith.constant 0 : i32
    return %c0_i32, %c0_i32_0 : i32, i32
  }
  func.func @transform_3(%arg0: i32) -> (i32, i32) {
    %c0_i32 = arith.constant 0 : i32
    %c0_i32_0 = arith.constant 0 : i32
    %c0_i32_1 = arith.constant 0 : i32
    return %c0_i32, %c0_i32_0 : i32, i32
  }
  func.func @transform_4(%arg0: i32) -> (i32, i32) {
    %c0_i32 = arith.constant 0 : i32
    %c0_i32_0 = arith.constant 0 : i32
    %c0_i32_1 = arith.constant 0 : i32
    return %c0_i32, %c0_i32_0 : i32, i32
  }
  func.func @transform_5(%arg0: i32) -> (i32, i32) {
    %c0_i32 = arith.constant 0 : i32
    %c0_i32_0 = arith.constant 0 : i32
    return %arg0, %c0_i32 : i32, i32
  }
}

</mosaic_0001>

<bundles_post_ra>
// kernel: tpu_custom_call.1
= control target key start
LH: loop header
LB: loop body
LE: loop exit
PB: predicated region body
PF: predicated region fallthrough
CT: control target
= control target key end

     0   :  { %10 = vsyncpa [#allocation3], 0  ;;  %s1086_s0 = inlined_call_operand.hbm [shape: f32[8,100], index: 0, kind: input, shape index: {}]   ;;  %s1087_s1 = inlined_call_operand.hbm [shape: bf16[100,512], index: 1, kind: input, shape index: {}]   ;;  %s1088_s2 = inlined_call_operand.vmem [shape: f32[1,512], index: 2, kind: input, shape index: {}]   ;;  %s1089_s3 = inlined_call_operand.hbm [shape: bf16[512,128], index: 3, kind: input, shape index: {}]   ;;  %s1090_s4 = inlined_call_operand.vmem [shape: f32[1,128], index: 4, kind: input, shape index: {}]   ;;  %s1091_s5 = inlined_call_operand.hbm [shape: bf16[8,128], index: 5, kind: output, shape index: {}]  }
   0x1   :  { %11 = vsyncpa [#allocation6], 0 }
   0x2   :  { %12 = vsyncpa [#allocation4], 0  ;;  %s993_s18 = smov [#allocation5]   ;;  %s899_s22 = scalar_lea.hbm %s1087_s1, 3328 }
   0x3   :  { %s28_s19 = sshll.u32 %s993_s18, 4  ;;  %p900_p0 = scmp.ne.s32.totalorder %s1087_s1, %s899_s22  ;;  %s29_s19 = int_to_ptr.vmem [resolvable:$true] %s28_s19 }
   0x4   :  { %p903_p1 = scmp.lt.u32.totalorder %s899_s22, %s1087_s1 }
   0x6   :  { %p905_p2 = pnand %p903_p1, %p900_p0 }
   0x8   :  { %908 = shalt.err (!%p905_p2)
}
   0x9   :  { %s909_s27 = scalar_lea.vmem %s29_s19, 3328  ;;  %p914_p4 = scmp.lt.s32.totalorder %s29_s19, %s29_s19 }
   0xa   :  { %p910_p3 = scmp.ne.s32.totalorder %s29_s19, %s909_s27  ;;  %p915_p5 = scmp.lt.s32.totalorder %s909_s27, %s909_s27 }
   0xc   :  { %p916_p6 = por %p915_p5, %p914_p4 }
   0xe   :  { %p917_p7 = pnand %p916_p6, %p910_p3 }
  0x10   :  { %920 = shalt.err (!%p917_p7)
}
  0x11   :  { %s994_s28 = smov 256   ;;  %s995_s29 = smov 16  }
  0x12   :  { %34 = dma.hbm_to_vmem [thread:$0]  %s1087_s1, 3328, %s29_s19, [#allocation6], %s994_s28, %s994_s28, %s995_s29  }
  0x13   :  { %s996_s7 = smov [#allocation2]   ;;  %s997_s9 = smov [#allocation7]  }
  0x14   :  { %s19_s8 = sshll.u32 %s996_s7, 4  ;;  %s42_s10 = sshll.u32 %s997_s9, 4  ;;  %s20_s8 = int_to_ptr.vmem [resolvable:$true] %s19_s8  ;;  %s43_s10 = int_to_ptr.vmem [resolvable:$true] %s42_s10 }
  0x15   :  { %s921_s13 = scalar_lea.hbm %s1086_s0, 128 }
  0x16   :  { %p922_p8 = scmp.ne.s32.totalorder %s1086_s0, %s921_s13  ;;  %p925_p9 = scmp.lt.u32.totalorder %s921_s13, %s1086_s0 }
  0x18   :  { %p927_p10 = pnand %p925_p9, %p922_p8 }
  0x1a   :  { %930 = shalt.err (!%p927_p10)
}
  0x1b   :  { %s931_s1 = scalar_lea.vmem %s20_s8, 128  ;;  %p936_p12 = scmp.lt.s32.totalorder %s20_s8, %s20_s8 }
  0x1c   :  { %p932_p11 = scmp.ne.s32.totalorder %s20_s8, %s931_s1  ;;  %p937_p13 = scmp.lt.s32.totalorder %s931_s1, %s931_s1 }
  0x1e   :  { %p938_p0 = por %p937_p13, %p936_p12 }
  0x20   :  { %p939_p1 = pnand %p938_p0, %p932_p11 }
  0x22   :  { %942 = shalt.err (!%p939_p1)
}
  0x23   :  { %22 = dma.hbm_to_vmem [thread:$0]  %s1086_s0, 128, %s20_s8, [#allocation3]  }
  0x24   :  { %s943_s22 = scalar_lea.hbm %s1089_s3, 4096 }
  0x25   :  { %p944_p2 = scmp.ne.s32.totalorder %s1089_s3, %s943_s22  ;;  %p947_p3 = scmp.lt.u32.totalorder %s943_s22, %s1089_s3 }
  0x27   :  { %p949_p4 = pnand %p947_p3, %p944_p2 }
  0x29   :  { %952 = shalt.err (!%p949_p4)
}
  0x2a   :  { %s953_s27 = scalar_lea.vmem %s43_s10, 4096  ;;  %p958_p6 = scmp.lt.s32.totalorder %s43_s10, %s43_s10 }
  0x2b   :  { %p954_p5 = scmp.ne.s32.totalorder %s43_s10, %s953_s27  ;;  %p959_p7 = scmp.lt.s32.totalorder %s953_s27, %s953_s27 }
  0x2d   :  { %p960_p8 = por %p959_p7, %p958_p6 }
  0x2f   :  { %p961_p9 = pnand %p960_p8, %p954_p5 }
  0x31   :  { %964 = shalt.err (!%p961_p9)
}
  0x32   :  { %s998_s0 = smov 64   ;;  %s999_s28 = smov 4  }
  0x33   :  { %48 = dma.hbm_to_vmem [thread:$0]  %s1089_s3, 4096, %s43_s10, [#allocation6], %s998_s0, %s998_s0, %s999_s28  }
  0x34   :  { %987 = dma.done.wait [#allocation3], 128  }
  0x35   :  { %988 = vsyncadd [#allocation3], 4294967168 }
  0x36   :  { %989 = dma.done.wait [#allocation6], 7424  }
  0x37   :  { %990 = vsyncadd [#allocation6], 4294959872  ;;  %v1000_v0 = vmov 0   ;;  %v827_v1 = vld [vmem:[#allocation5 + $0x4] ss:$16 sps:$4 sm:$0xff]   ;;  %vm245_vm0 = vcmask 1041408  }
  0x38   :  { %290 = vmatprep.mubr.bf16.mxu0 %v1000_v0  ;;  %331 = vmatprep.mubr.bf16.mxu1 %v1000_v0  ;;  %v829_v2 = vld [vmem:[#allocation5 + $0xc] ss:$16 sps:$4 sm:$0xff]   ;;  %v831_v3 = vld [vmem:[#allocation5] ss:$16 sps:$4 sm:$0xff]   ;;  %v832_v4 = vld [vmem:[#allocation5 + $0x8] ss:$16 sps:$4 sm:$0xff]  }
  0x39   :  { %258 = vmatprep.subr.bf16.mxu0 %v827_v1  ;;  %299 = vmatprep.subr.bf16.mxu1 %v829_v2  ;;  %v833_v5 = vld [vmem:[#allocation5 + $0x24] ss:$16 sps:$4 sm:$0xff]   ;;  %v835_v6 = vld [vmem:[#allocation5 + $0x2c] ss:$16 sps:$4 sm:$0xff]   ;;  %v837_v7 = vld [vmem:[#allocation5 + $0x20] ss:$16 sps:$4 sm:$0xff]  }
  0x3a   :  { %259 = vmatpush1.bf16.msra.mxu0 %v831_v3  ;;  %300 = vmatpush1.bf16.msra.mxu1 %v832_v4  ;;  %v838_v8 = vld [vmem:[#allocation5 + $0x28] ss:$16 sps:$4 sm:$0xff]   ;;  %v839_v9 = vld [vmem:[#allocation5 + $0x44] ss:$16 sps:$4 sm:$0xff]   ;;  %v841_v10 = vld [vmem:[#allocation5 + $0x4c] ss:$16 sps:$4 sm:$0xff]   ;;  %v91_v3 = vlaneseq }
  0x3b   :  { %260 = vmatprep.subr.bf16.mxu0 %v833_v5  ;;  %301 = vmatprep.subr.bf16.mxu1 %v835_v6  ;;  %v843_v11 = vld [vmem:[#allocation5 + $0x40] ss:$16 sps:$4 sm:$0xff]   ;;  %v844_v12 = vld [vmem:[#allocation5 + $0x48] ss:$16 sps:$4 sm:$0xff]   ;;  %v845_v13 = vld [vmem:[#allocation5 + $0x64] ss:$16 sps:$4 sm:$0xff]  }
  0x3c   :  { %v847_v14 = vld [vmem:[#allocation5 + $0x6c] ss:$16 sps:$4 sm:$0xff]   ;;  %v849_v15 = vld [vmem:[#allocation5 + $0x60] ss:$16 sps:$4 sm:$0xff]   ;;  %v850_v16 = vld [vmem:[#allocation5 + $0x68] ss:$16 sps:$4 sm:$0xff]  }
  0x3d   :  { %v851_v17 = vld [vmem:[#allocation5 + $0x84] ss:$16 sps:$4 sm:$0xff]   ;;  %v853_v18 = vld [vmem:[#allocation5 + $0x8c] ss:$16 sps:$4 sm:$0xff]   ;;  %v855_v19 = vld [vmem:[#allocation5 + $0x80] ss:$16 sps:$4 sm:$0xff]  }
  0x3e   :  { %261 = vmatpush1.bf16.msra.mxu0 %v837_v7  ;;  %302 = vmatpush1.bf16.msra.mxu1 %v838_v8  ;;  %v856_v20 = vld [vmem:[#allocation5 + $0x88] ss:$16 sps:$4 sm:$0xff]   ;;  %v857_v21 = vld [vmem:[#allocation5 + $0xa4] ss:$16 sps:$4 sm:$0xff]   ;;  %v859_v22 = vld [vmem:[#allocation5 + $0xac] ss:$16 sps:$4 sm:$0xff]  }
  0x3f   :  { %262 = vmatprep.subr.bf16.mxu0 %v839_v9  ;;  %303 = vmatprep.subr.bf16.mxu1 %v841_v10  ;;  %v87_v23 = vld [vmem:[#allocation5 + $0xc0] sm:$0x33]  ;;  %v88_v24 = vld [vmem:[#allocation5 + $0xc8] sm:$0x33]  ;;  %v61_v31 = vld [vmem:[#allocation2] sm:$0xff]  ;;  %vm241_vm1 = vcmask 818176  }
  0x40   :  { %v861_v25 = vld [vmem:[#allocation5 + $0xa0] ss:$16 sps:$4 sm:$0xff]   ;;  %v862_v26 = vld [vmem:[#allocation5 + $0xa8] ss:$16 sps:$4 sm:$0xff]   ;;  %v734_v27 = vcombine.high %v87_v23, %v87_v23  ;;  %v736_v28 = vcombine.high %v88_v24, %v88_v24  ;;  %v733_v29 = vcombine.low %v87_v23, %v87_v23  ;;  %v735_v30 = vcombine.low %v88_v24, %v88_v24  ;;  %s1001_s8 = smov [#allocation8]  }
  0x41   :  { %v867_v32 = vld [vmem:[#allocation7 + $0x40] sm:$0xff]   ;;  %v62_v37 = vpack.c.bf16 %v61_v31, %v61_v31  ;;  %v871_v39 = vld [vmem:[#allocation7 + $0x48] sm:$0xff]   ;;  %v875_v43 = vld [vmem:[#allocation7 + $0x50] sm:$0xff]   ;;  %v92_v4 = vshrl.u32 %v91_v3, 7  ;;  %s699_s9 = sshll.u32 %s1001_s8, 4  ;;  %s700_s9 = int_to_ptr.vmem [resolvable:$true] %s699_s9 }
  0x42   :  { %263 = vmatpush1.bf16.msra.mxu0 %v843_v11  ;;  %304 = vmatpush1.bf16.msra.mxu1 %v844_v12  ;;  %v868_v33 = vld [vmem:[#allocation7 + $0xc0] sm:$0xff]   ;;  %v247_v34 = vsel %vm245_vm0, %v733_v29, 0  ;;  %v253_v35 = vsel %vm245_vm0, %v735_v30, 0  ;;  %v872_v40 = vld [vmem:[#allocation7 + $0xc8] sm:$0xff]   ;;  %v876_v44 = vld [vmem:[#allocation7 + $0xd0] sm:$0xff]   ;;  %s965_s10 = scalar_lea.vmem %s700_s9, 64  ;;  %p970_p11 = scmp.lt.s32.totalorder %s700_s9, %s700_s9 }
  0x43   :  { %264 = vmatprep.subr.bf16.mxu0 %v845_v13  ;;  %305 = vmatprep.subr.bf16.mxu1 %v847_v14  ;;  %v869_v36 = vld [vmem:[#allocation7] sm:$0xff]   ;;  %v873_v41 = vld [vmem:[#allocation7 + $0x8] sm:$0xff]   ;;  %v877_v45 = vld [vmem:[#allocation7 + $0x10] sm:$0xff]   ;;  %v93_v5 = vsub.s32 0, %v92_v4  ;;  %v101_v6 = vsub.s32 2, %v92_v4  ;;  %v97_v8 = vsub.s32 1, %v92_v4  ;;  %p966_p10 = scmp.ne.s32.totalorder %s700_s9, %s965_s10  ;;  %p971_p12 = scmp.lt.s32.totalorder %s965_s10, %s965_s10 }
  0x44   :  { %v870_v38 = vld [vmem:[#allocation7 + $0x80] sm:$0xff]   ;;  %v874_v42 = vld [vmem:[#allocation7 + $0x88] sm:$0xff]   ;;  %v878_v46 = vld [vmem:[#allocation7 + $0x90] sm:$0xff]   ;;  %v105_v9 = vsub.s32 3, %v92_v4 }
  0x45   :  { %v879_v47 = vld [vmem:[#allocation7 + $0x58] sm:$0xff]   ;;  %v883_v51 = vld [vmem:[#allocation7 + $0x60] sm:$0xff]   ;;  %v887_v55 = vld [vmem:[#allocation7 + $0x68] sm:$0xff]   ;;  %p972_p13 = por %p971_p12, %p970_p11 }
  0x46   :  { %265 = vmatpush1.bf16.msra.mxu0 %v849_v15  ;;  %306 = vmatpush1.bf16.msra.mxu1 %v850_v16  ;;  %v880_v48 = vld [vmem:[#allocation7 + $0xd8] sm:$0xff]   ;;  %v884_v52 = vld [vmem:[#allocation7 + $0xe0] sm:$0xff]   ;;  %v888_v56 = vld [vmem:[#allocation7 + $0xe8] sm:$0xff]  }
  0x47   :  { %266 = vmatprep.subr.bf16.mxu0 %v851_v17  ;;  %307 = vmatprep.subr.bf16.mxu1 %v853_v18  ;;  %v881_v49 = vld [vmem:[#allocation7 + $0x18] sm:$0xff]   ;;  %v885_v53 = vld [vmem:[#allocation7 + $0x20] sm:$0xff]   ;;  %v889_v57 = vld [vmem:[#allocation7 + $0x28] sm:$0xff]   ;;  %p973_p0 = pnand %p972_p13, %p966_p10 }
  0x48   :  { %v882_v50 = vld [vmem:[#allocation7 + $0x98] sm:$0xff]   ;;  %v886_v54 = vld [vmem:[#allocation7 + $0xa0] sm:$0xff]   ;;  %v890_v58 = vld [vmem:[#allocation7 + $0xa8] sm:$0xff]  }
  0x49   :  { %v891_v59 = vld [vmem:[#allocation7 + $0x70] sm:$0xff]   ;;  %v895_v63 = vld [vmem:[#allocation7 + $0x78] sm:$0xff]   ;;  %v89_v7 = vld [vmem:[%s1088_s2] sm:$0xf] }
  0x4a   :  { %267 = vmatpush1.bf16.msra.mxu0 %v855_v19  ;;  %308 = vmatpush1.bf16.msra.mxu1 %v856_v20  ;;  %v892_v60 = vld [vmem:[#allocation7 + $0xf0] sm:$0xff]   ;;  %v896_v0 = vld [vmem:[#allocation7 + $0xf8] sm:$0xff]   ;;  %v94_v10 = vrot.slane %v89_v7, %v93_v5  ;;  %v102_v11 = vrot.slane %v89_v7, %v101_v6  ;;  %v98_v12 = vrot.slane %v89_v7, %v97_v8 }
  0x4b   :  { %268 = vmatprep.subr.bf16.mxu0 %v857_v21  ;;  %309 = vmatprep.subr.bf16.mxu1 %v859_v22  ;;  %v893_v61 = vld [vmem:[#allocation7 + $0x30] sm:$0xff]   ;;  %v897_v1 = vld [vmem:[#allocation7 + $0x38] sm:$0xff]   ;;  %v106_v13 = vrot.slane %v89_v7, %v105_v9 }
  0x4c   :  { %v894_v62 = vld [vmem:[#allocation7 + $0xb0] sm:$0xff]   ;;  %v898_v2 = vld [vmem:[#allocation7 + $0xb8] sm:$0xff]  }
  0x4e   :  { %269 = vmatpush1.bf16.msra.mxu0 %v861_v25  ;;  %310 = vmatpush1.bf16.msra.mxu1 %v862_v26 }
  0x4f   :  { %737 = vmatprep.subr.msk.bf16.mxu0 %vm245_vm0, %v734_v27  ;;  %739 = vmatprep.subr.msk.bf16.mxu1 %vm245_vm0, %v736_v28 }
  0x52   :  { %271 = vmatpush1.bf16.msra.mxu0 %v247_v34  ;;  %312 = vmatpush1.bf16.msra.mxu1 %v253_v35 }
  0x53   :  { %774 = vmatprep.subr.bf16.mxu0 %v867_v32  ;;  %796 = vmatprep.subr.bf16.mxu1 %v868_v33 }
  0x55   :  { %738 = vmatmul.mubr.msk.bf16.vlgmr.msra.gmra.mrb[0].mxu0 %vm241_vm1, %v62_v37  ;;  %740 = vmatmul.mubr.msk.bf16.vlgmr.msra.gmra.mrb[0].mxu1 %vm241_vm1, %v62_v37 }
  0x56   :  { %775 = vmatpush3.bf16.msra.mxu0 %v869_v36  ;;  %797 = vmatpush3.bf16.msra.mxu1 %v870_v38  ;;  %v741_v36 = vld [vmem:[%s1090_s4] ss:$0 sm:$0xff] }
  0x57   :  { %776 = vmatprep.subr.bf16.mxu0 %v871_v39  ;;  %798 = vmatprep.subr.bf16.mxu1 %v872_v40 }
  0x5a   :  { %777 = vmatpush3.bf16.msra.mxu0 %v873_v41  ;;  %799 = vmatpush3.bf16.msra.mxu1 %v874_v42 }
  0x5b   :  { %778 = vmatprep.subr.bf16.mxu0 %v875_v43  ;;  %800 = vmatprep.subr.bf16.mxu1 %v876_v44 }
  0x5e   :  { %779 = vmatpush3.bf16.msra.mxu0 %v877_v45  ;;  %801 = vmatpush3.bf16.msra.mxu1 %v878_v46 }
  0x5f   :  { %780 = vmatprep.subr.bf16.mxu0 %v879_v47  ;;  %802 = vmatprep.subr.bf16.mxu1 %v880_v48 }
  0x62   :  { %781 = vmatpush3.bf16.msra.mxu0 %v881_v49  ;;  %803 = vmatpush3.bf16.msra.mxu1 %v882_v50 }
  0x63   :  { %782 = vmatprep.subr.bf16.mxu0 %v883_v51  ;;  %804 = vmatprep.subr.bf16.mxu1 %v884_v52 }
  0x66   :  { %783 = vmatpush3.bf16.msra.mxu0 %v885_v53  ;;  %805 = vmatpush3.bf16.msra.mxu1 %v886_v54 }
  0x67   :  { %784 = vmatprep.subr.bf16.mxu0 %v887_v55  ;;  %806 = vmatprep.subr.bf16.mxu1 %v888_v56 }
  0x6a   :  { %785 = vmatpush3.bf16.msra.mxu0 %v889_v57  ;;  %807 = vmatpush3.bf16.msra.mxu1 %v890_v58 }
  0x6b   :  { %786 = vmatprep.subr.bf16.mxu0 %v891_v59  ;;  %808 = vmatprep.subr.bf16.mxu1 %v892_v60 }
  0x6e   :  { %787 = vmatpush3.bf16.msra.mxu0 %v893_v61  ;;  %809 = vmatpush3.bf16.msra.mxu1 %v894_v62 }
  0x6f   :  { %788 = vmatprep.subr.bf16.mxu0 %v895_v63  ;;  %810 = vmatprep.subr.bf16.mxu1 %v896_v0 }
  0x72   :  { %789 = vmatpush3.bf16.msra.mxu0 %v897_v1  ;;  %811 = vmatpush3.bf16.msra.mxu1 %v898_v2 }
 0x128   :  { %v292_v14 = vpop.f32.mrb[0].mxu0  ;;  %v333_v15 = vpop.f32.mrb[0].mxu1 }
 0x129   :  { %v293_v16 = vadd.f32 %v292_v14, %v94_v10  ;;  %v334_v17 = vadd.f32 %v333_v15, %v102_v11  ;;  %v294_v18 = vpop.f32.mrb[1].mxu0  ;;  %v335_v19 = vpop.f32.mrb[1].mxu1 }
 0x12a   :  { %v295_v20 = vadd.f32 %v294_v18, %v98_v12  ;;  %v336_v21 = vadd.f32 %v335_v19, %v106_v13  ;;  %v296_v22 = vpop.f32.mrb[2].mxu0  ;;  %v337_v23 = vpop.f32.mrb[2].mxu1 }
 0x12b   :  { %v340_v24 = vmax.f32 %v293_v16, 0.0  ;;  %v342_v25 = vmax.f32 %v334_v17, 0.0  ;;  %v297_v26 = vpop.f32.mrb[3].mxu0  ;;  %v338_v27 = vpop.f32.mrb[3].mxu1 }
 0x12c   :  { %v341_v28 = vmax.f32 %v295_v20, 0.0  ;;  %v343_v29 = vmax.f32 %v336_v21, 0.0 }
 0x12d   :  { %v346_v30 = vpack.c.bf16 %v342_v25, %v342_v25  ;;  %v344_v33 = vpack.c.bf16 %v340_v24, %v340_v24 }
 0x12e   :  { %v345_v31 = vpack.c.bf16 %v341_v28, %v341_v28  ;;  %v347_v32 = vpack.c.bf16 %v343_v29, %v343_v29 }
 0x130   :  { %643 = vmatprep.mubr.bf16.mxu0 %v345_v31  ;;  %683 = vmatprep.mubr.bf16.mxu1 %v347_v32 }
 0x131   :  { %644 = vmatmul.mubr.bf16.vlgmr.msra.gmra.mrb[4].mxu0 %v344_v33  ;;  %684 = vmatmul.mubr.bf16.vlgmr.msra.gmra.mrb[4].mxu1 %v346_v30 }
 0x204   :  { %v790_v34 = vpop.f32.mrb[4].mxu0  ;;  %v812_v35 = vpop.f32.mrb[4].mxu1 }
 0x205   :  { %v791_v37 = vpop.f32.mrb[5].mxu0  ;;  %v813_v38 = vpop.f32.mrb[5].mxu1 }
 0x206   :  { %v792_v39 = vadd.f32 %v791_v37, %v790_v34  ;;  %v814_v40 = vadd.f32 %v813_v38, %v812_v35  ;;  %v793_v41 = vpop.f32.mrb[6].mxu0  ;;  %v815_v42 = vpop.f32.mrb[6].mxu1 }
 0x207   :  { %v794_v43 = vpop.f32.mrb[7].mxu0  ;;  %v816_v44 = vpop.f32.mrb[7].mxu1 }
 0x208   :  { %v646_v45 = vadd.f32 %v792_v39, %v741_v36 }
 0x20a   :  { %v686_v46 = vadd.f32 %v814_v40, %v646_v45 }
 0x20c   :  { %v691_v47 = vpack.c.bf16 %v686_v46, %v686_v46 }
 0x20e   :  { %692 = vst [vmem:[#allocation8] sm:$0xf] %v691_v47 }
 0x20f   :  { %976 = shalt.err (!%p973_p0)
}
 0x210   :  { %s977_s12 = scalar_lea.hbm %s1091_s5, 64 }
 0x211   :  { %p978_p1 = scmp.ne.s32.totalorder %s1091_s5, %s977_s12  ;;  %p981_p2 = scmp.lt.u32.totalorder %s977_s12, %s1091_s5 }
 0x213   :  { %p983_p3 = pnand %p981_p2, %p978_p1 }
 0x215   :  { %986 = shalt.err (!%p983_p3)
}
 0x216   :  { %702 = dma.vmem_to_hbm [thread:$0]  %s700_s9, 64, %s1091_s5, [#allocation4]  }
 0x217   :  { %991 = dma.done.wait [#allocation4], 64  }
 0x218   :  { %992 = vsyncadd [#allocation4], 4294967232 }
 0x219   :  { %706 = vsyncpa [#allocation3], 1 }
 0x21a   :  { %707 = vsyncpa [#allocation6], 1 }
 0x21b   :  { %708 = vsyncpa [#allocation4], 1 }

</bundles_post_ra>
